<compile_context>
chip_gen: v5e
topology: v5e:2x2
jax: 0.10.0
libtpu: 0.0.40
codegen_flags: <defaults>
</compile_context>

<pallas_src>
import jax
import jax.numpy as jnp
from jax.experimental import pallas as pl
from jax.experimental.pallas import tpu as pltpu

FEAT_C = 2048          # inception_v3 feature channels (Linear in_features)
FEAT_H = 8             # spatial size of Mixed_7c output for 299x299 input
FEAT_W = 8
NUM_CLASSES = 5        # classification_head out_features


def _head_kernel(x_ref, w_ref, b_ref, out_ref, y_ref):
    """Fused global average pool + classification head for one batch tile.

    x_ref:   (bt, C, S)  feature block in the backbone's native NCHW order
                         (C on sublanes, S = H*W on lanes) -- no transpose anywhere.
    w_ref:   (N, C)      head weight with the 1/S pooling factor folded in (resident).
    b_ref:   (1, N)      head bias (f32).
    out_ref: (bt, N)     logits.
    y_ref:   (bt, N, S)  f32 scratch: per-row MXU results before the spatial sum.
    """
    bt = out_ref.shape[0]
    w = w_ref[...]                                   # (N, C), tiny, hoisted out of the loop

    @pl.loop(0, bt)
    def _(row):
        # (N, C) @ (C, S) on the MXU: contract channels, keep spatial on lanes.
        y_ref[row] = jnp.dot(w, x_ref[row], preferred_element_type=jnp.float32)

    # Spatial sum == global average pool (1/S already folded into w), then bias.
    out_ref[...] = (jnp.sum(y_ref[...], axis=-1) + b_ref[...]).astype(out_ref.dtype)


def _pick_batch_tile(batch):
    """Batch tile: multiple of 8 (output block sublane rule) that divides B, else whole B."""
    for bt in (16, 8):
        if batch % bt == 0:
            return bt
    return batch


def transferred_inception_head(feats_nchw, w_head, b_head):
    """feats_nchw: (B, 2048, 8, 8) backbone (Mixed_7c) feature map, f32 or bf16 (NCHW).
    w_head: (NUM_CLASSES, 2048) like nn.Linear.weight.  b_head: (NUM_CLASSES,).
    Returns logits (B, NUM_CLASSES) f32, identical to avgpool -> flatten -> Linear.
    """
    B, C, H, W = feats_nchw.shape
    S = H * W
    N = w_head.shape[0]

    # Free, contiguous view: no extra HBM pass over the feature map.
    x = feats_nchw.reshape(B, C, S)
    compute_dtype = x.dtype                      # accept bf16 backbone outputs as-is
    itemsize = jnp.dtype(compute_dtype).itemsize

    # Fold the 1/S global-average-pool factor into the head weight once.
    w = (w_head.astype(jnp.float32) / float(S)).astype(compute_dtype)   # (N, C)
    b2 = b_head.reshape(1, N).astype(jnp.float32)

    bt = _pick_batch_tile(B)
    grid = (B // bt,)

    cost = pl.CostEstimate(
        flops=2 * B * C * S * N,
        transcendentals=0,
        bytes_accessed=B * C * S * itemsize + N * C * itemsize + B * N * 4,
    )

    return pl.pallas_call(
        _head_kernel,
        out_shape=jax.ShapeDtypeStruct((B, N), jnp.float32),
        grid=grid,
        in_specs=[
            pl.BlockSpec((bt, C, S), lambda i: (i, 0, 0)),   # streamed feature tiles
            pl.BlockSpec((N, C), lambda i: (0, 0)),          # resident weight
            pl.BlockSpec((1, N), lambda i: (0, 0)),          # resident bias
        ],
        out_specs=pl.BlockSpec((bt, N), lambda i: (i, 0)),
        scratch_shapes=[pltpu.VMEM((bt, N, S), jnp.float32)],
        compiler_params=pltpu.CompilerParams(
            dimension_semantics=("parallel",),               # v7x: split batch over 2 TCs
            vmem_limit_bytes=32 * 1024 * 1024,
        ),
        cost_estimate=cost,
    )(x, w, b2)


if __name__ == "__main__":
    key = jax.random.PRNGKey(0)
    k_feat, k_w, k_b = jax.random.split(key, 3)

    # Deterministic nn.Linear(2048, 5)-style init: U(-1/sqrt(in), 1/sqrt(in)).
    bound = 1.0 / float(FEAT_C) ** 0.5
    w_head = jax.random.uniform(k_w, (NUM_CLASSES, FEAT_C), jnp.float32, -bound, bound)
    b_head = jax.random.uniform(k_b, (NUM_CLASSES,), jnp.float32, -bound, bound)

    def reference(feats):
        # Pure-JAX reference of the same tail (avgpool -> flatten -> Linear) in f32.
        pooled = jnp.mean(feats.astype(jnp.float32), axis=(2, 3))        # (B, 2048)
        return pooled @ w_head.T + b_head                                 # (B, 5)

    # batch=2 exercises the small single-block path; batch=32 exercises the pipelined
    # multi-step grid (bt=16, grid=(2,), batch axis parallel).
    for batch in (2, 32):
        kf = jax.random.fold_in(k_feat, batch)
        # Stand-in for the frozen inception_v3 backbone output (Mixed_7c, pre-avgpool),
        # emitted in bf16 so the memory-bound head reads half the bytes.
        feats = jax.random.normal(
            kf, (batch, FEAT_C, FEAT_H, FEAT_W), dtype=jnp.float32).astype(jnp.bfloat16)

        logits = jax.block_until_ready(
            transferred_inception_head(feats, w_head, b_head))
        ref = reference(feats)

        assert logits.shape == (batch, NUM_CLASSES)
        assert jnp.allclose(logits, ref, atol=2e-2, rtol=2e-2), (
            f"mismatch vs reference at batch={batch}: "
            f"max abs err {jnp.max(jnp.abs(logits - ref))}")

    print("KERNEL_OK")
</pallas_src>

<mosaic_0001>
module attributes {stable_mosaic.version = 11 : i64} {
  func.func @_head_kernel(%arg0: i32, %arg1: memref<2x2048x64xbf16, #tpu.memory_space<vmem>>, %arg2: memref<5x2048xbf16, #tpu.memory_space<vmem>>, %arg3: memref<1x5xf32, #tpu.memory_space<vmem>>, %arg4: memref<2x5xf32, #tpu.memory_space<vmem>>, %arg5: memref<2x5x64xf32, #tpu.memory_space<vmem>>) attributes {dimension_semantics = [#tpu.dimension_semantics<parallel>], iteration_bounds = array<i64: 1>, scalar_prefetch = 0 : i64, scratch_operands = 1 : i64, tpu.core_type = #tpu.core_type<tc>, window_params = [{transform_indices = @transform_0, window_bounds = array<i64: 2, 2048, 64>}, {pipeline_mode = #tpu.pipeline_mode<synchronous>, transform_indices = @transform_1, window_bounds = array<i64: 5, 2048>}, {pipeline_mode = #tpu.pipeline_mode<synchronous>, transform_indices = @transform_2, window_bounds = array<i64: 1, 5>}, {transform_indices = @transform_3, window_bounds = array<i64: 2, 5>}]} {
    %c0 = arith.constant 0 : index
    %c0_0 = arith.constant 0 : index
    %0 = vector.load %arg2[%c0, %c0_0] : memref<5x2048xbf16, #tpu.memory_space<vmem>>, vector<5x2048xbf16>
    %c0_i32 = arith.constant 0 : i32
    %c2_i32 = arith.constant 2 : i32
    %1 = arith.addi %c0_i32, %c2_i32 : i32
    %c1_i32 = arith.constant 1 : i32
    scf.for %arg6 = %c0_i32 to %1 step %c1_i32  : i32 {
      %c1_i32_9 = arith.constant 1 : i32
      %8 = arith.muli %arg6, %c1_i32_9 : i32
      %c0_i32_10 = arith.constant 0 : i32
      %9 = arith.addi %c0_i32_10, %8 : i32
      %10 = arith.index_cast %9 : i32 to index
      %c0_11 = arith.constant 0 : index
      %c0_12 = arith.constant 0 : index
      %11 = vector.load %arg1[%10, %c0_11, %c0_12] : memref<2x2048x64xbf16, #tpu.memory_space<vmem>>, vector<1x2048x64xbf16>
      %12 = vector.shape_cast %11 : vector<1x2048x64xbf16> to vector<2048x64xbf16>
      %cst_13 = arith.constant dense<0.000000e+00> : vector<5x64xf32>
      %13 = tpu.matmul %0, %12, %cst_13 {dimension_numbers = #tpu.dot_dimension_numbers<[1], [0], [0], [1], [0, 0, 1, 1], [], []>} : vector<5x2048xbf16>, vector<2048x64xbf16>, vector<5x64xf32> -> vector<5x64xf32>
      %14 = arith.index_cast %9 : i32 to index
      %c0_14 = arith.constant 0 : index
      %c0_15 = arith.constant 0 : index
      %15 = vector.load %arg5[%14, %c0_14, %c0_15] : memref<2x5x64xf32, #tpu.memory_space<vmem>>, vector<1x5x64xf32>
      %16 = vector.shape_cast %15 : vector<1x5x64xf32> to vector<5x64xf32>
      %17 = vector.shape_cast %13 : vector<5x64xf32> to vector<1x5x64xf32>
      tpu.vector_store %arg5[%14, %c0_14, %c0_15], %17 {strides = array<i32>} : memref<2x5x64xf32, #tpu.memory_space<vmem>>, vector<1x5x64xf32>,
    }
    %c2_i32_1 = arith.constant 2 : i32
    %c0_2 = arith.constant 0 : index
    %c0_3 = arith.constant 0 : index
    %c0_4 = arith.constant 0 : index
    %2 = vector.load %arg5[%c0_2, %c0_3, %c0_4] : memref<2x5x64xf32, #tpu.memory_space<vmem>>, vector<2x5x64xf32>
    %cst = arith.constant dense<0.000000e+00> : vector<2x5xf32>
    %3 = vector.multi_reduction <add>, %2, %cst [2] : vector<2x5x64xf32> to vector<2x5xf32>
    %c0_5 = arith.constant 0 : index
    %c0_6 = arith.constant 0 : index
    %4 = vector.load %arg3[%c0_5, %c0_6] : memref<1x5xf32, #tpu.memory_space<vmem>>, vector<1x5xf32>
    %5 = vector.broadcast %4 : vector<1x5xf32> to vector<2x5xf32>
    %6 = arith.addf %3, %5 : vector<2x5xf32>
    %c0_7 = arith.constant 0 : index
    %c0_8 = arith.constant 0 : index
    %7 = vector.load %arg4[%c0_7, %c0_8] : memref<2x5xf32, #tpu.memory_space<vmem>>, vector<2x5xf32>
    tpu.vector_store %arg4[%c0_7, %c0_8], %6 {strides = array<i32>} : memref<2x5xf32, #tpu.memory_space<vmem>>, vector<2x5xf32>,
    return
  }
  func.func @transform_0(%arg0: i32) -> (i32, i32, i32) {
    %c0_i32 = arith.constant 0 : i32
    %c0_i32_0 = arith.constant 0 : i32
    %c0_i32_1 = arith.constant 0 : i32
    return %arg0, %c0_i32, %c0_i32_0 : i32, i32, i32
  }
  func.func @transform_1(%arg0: i32) -> (i32, i32) {
    %c0_i32 = arith.constant 0 : i32
    %c0_i32_0 = arith.constant 0 : i32
    %c0_i32_1 = arith.constant 0 : i32
    return %c0_i32, %c0_i32_0 : i32, i32
  }
  func.func @transform_2(%arg0: i32) -> (i32, i32) {
    %c0_i32 = arith.constant 0 : i32
    %c0_i32_0 = arith.constant 0 : i32
    %c0_i32_1 = arith.constant 0 : i32
    return %c0_i32, %c0_i32_0 : i32, i32
  }
  func.func @transform_3(%arg0: i32) -> (i32, i32) {
    %c0_i32 = arith.constant 0 : i32
    %c0_i32_0 = arith.constant 0 : i32
    return %arg0, %c0_i32 : i32, i32
  }
}

</mosaic_0001>

<bundles_post_ra>
// kernel: tpu_custom_call.1
= control target key start
LH: loop header
LB: loop body
LE: loop exit
PB: predicated region body
PF: predicated region fallthrough
CT: control target
= control target key end

     0   :  { %8 = vsyncpa [#allocation4], 0  ;;  %s2142_s28 = smov 0   ;;  %s2310_s0 = inlined_call_operand.vmem [shape: bf16[2,2048,64], index: 0, kind: input, shape index: {}]   ;;  %s2311_s1 = inlined_call_operand.vmem [shape: bf16[5,2048], index: 1, kind: input, shape index: {}]   ;;  %s2312_s2 = inlined_call_operand.vmem [shape: f32[1,5], index: 2, kind: input, shape index: {}]   ;;  %s2313_s3 = inlined_call_operand.hbm [shape: f32[2,5], index: 3, kind: output, shape index: {}]  }
   0x1   :  { %v2105_v0 = vld [vmem:[%s2311_s1] sm:$0x77]  ;;  %v2110_v1 = vld [vmem:[%s2311_s1 + $0x8] sm:$0x77]  ;;  %v2115_v2 = vld [vmem:[%s2311_s1 + $0x10] sm:$0x77] }
   0x2   :  { %v2120_v3 = vld [vmem:[%s2311_s1 + $0x18] sm:$0x77]  ;;  %v2125_v4 = vld [vmem:[%s2311_s1 + $0x20] sm:$0x77]  ;;  %v2130_v5 = vld [vmem:[%s2311_s1 + $0x28] sm:$0x77] }
   0x3   :  { %v2135_v6 = vld [vmem:[%s2311_s1 + $0x30] sm:$0x77]  ;;  %v2140_v7 = vld [vmem:[%s2311_s1 + $0x38] sm:$0x77] }
   0x4 LB: > { %s1902_s29 = sshll.u32 %s2078_s28, 10  ;;  %v298_v38 = vunpack.c.l.b16 %v2110_v1  ;;  %v296_v39 = vunpack.c.l.b16 %v2105_v0  ;;  %v299_v42 = vunpack.c.h.b16 %v2110_v1  ;;  %v297_v43 = vunpack.c.h.b16 %v2105_v0  ;;  %s1901_s1 = sshll.u32 %s2078_s28, 3  ;;  %s2078_s28 = sphi %s2142_s28, %s28_s28  }
   0x5   : > { %s2151_s5 = scalar_lea.vmem %s2310_s0, %s1902_s29  ;;  %vm1322_vm0 = vcmask 520192   ;;  %s1321_s6 = scalar_lea.vmem [#allocation2], %s1901_s1 }
   0x6   : > { %v1910_v8 = vld [vmem:[%s2151_s5 + $0x38] sm:$0xff]  ;;  %v1909_v12 = vld [vmem:[%s2151_s5 + $0x30] sm:$0xff]  ;;  %v1908_v16 = vld [vmem:[%s2151_s5 + $0x28] sm:$0xff]  ;;  %v314_v48 = vpack.c.b16 %v298_v38, %v298_v38  ;;  %v312_v49 = vpack.c.b16 %v296_v39, %v296_v39  ;;  %v315_v50 = vpack.c.b16 %v299_v42, %v299_v42  ;;  %v313_v51 = vpack.c.b16 %v297_v43, %v297_v43  ;;  %s28_s28 = sadd.s32 1, %s2078_s28  }
   0x7   : > { %v1918_v9 = vld [vmem:[%s2151_s5 + $0x78] sm:$0xff]  ;;  %1112 = vmatpush.bf16.msra.mxu0 %v1910_v8  ;;  %v1917_v13 = vld [vmem:[%s2151_s5 + $0x70] sm:$0xff]  ;;  %v1916_v17 = vld [vmem:[%s2151_s5 + $0x68] sm:$0xff]  ;;  %p25_p0 = scmp.ge.s32.totalorder %s28_s28, 2  }
   0x8   : > { %v1926_v10 = vld [vmem:[%s2151_s5 + $0xb8] sm:$0xff]  ;;  %1125 = vmatpush.bf16.msra.mxu1 %v1918_v9  ;;  %v1925_v14 = vld [vmem:[%s2151_s5 + $0xb0] sm:$0xff]  ;;  %v1924_v18 = vld [vmem:[%s2151_s5 + $0xa8] sm:$0xff]  ;;  %s2081_s0 = smov (%p25_p0), [#allocation3]   ;;  %vm1357_vm1 = vcmask (%p25_p0), 1041409   ;;  %vm1360_vm2 = vcmask (%p25_p0), 33792  }
   0x9   : > { %v1934_v11 = vld [vmem:[%s2151_s5 + $0xf8] sm:$0xff]  ;;  %1138 = vmatpush.bf16.msra.mxu2 %v1926_v10  ;;  %v1933_v15 = vld [vmem:[%s2151_s5 + $0xf0] sm:$0xff]  ;;  %v1932_v19 = vld [vmem:[%s2151_s5 + $0xe8] sm:$0xff]  ;;  %s1367_s9 = sshll.u32 (%p25_p0), %s2081_s0, 4  ;;  %s1368_s9 = int_to_ptr.vmem [resolvable:$true] %s1367_s9 }
   0xa   : > { %1151 = vmatpush.bf16.msra.mxu3 %v1934_v11  ;;  %v1907_v20 = vld [vmem:[%s2151_s5 + $0x20] sm:$0xff]  ;;  %v1906_v24 = vld [vmem:[%s2151_s5 + $0x18] sm:$0xff]  ;;  %v1905_v28 = vld [vmem:[%s2151_s5 + $0x10] sm:$0xff] }
   0xb   : > { %1113 = vmatpush.bf16.msra.mxu0 %v1909_v12  ;;  %v1915_v21 = vld [vmem:[%s2151_s5 + $0x60] sm:$0xff]  ;;  %v1914_v25 = vld [vmem:[%s2151_s5 + $0x58] sm:$0xff]  ;;  %v1913_v29 = vld [vmem:[%s2151_s5 + $0x50] sm:$0xff] }
   0xc   : > { %1126 = vmatpush.bf16.msra.mxu1 %v1917_v13  ;;  %v1923_v22 = vld [vmem:[%s2151_s5 + $0xa0] sm:$0xff]  ;;  %v1922_v26 = vld [vmem:[%s2151_s5 + $0x98] sm:$0xff]  ;;  %v1921_v30 = vld [vmem:[%s2151_s5 + $0x90] sm:$0xff] }
   0xd   : > { %1139 = vmatpush.bf16.msra.mxu2 %v1925_v14  ;;  %v1931_v23 = vld [vmem:[%s2151_s5 + $0xe0] sm:$0xff]  ;;  %v1930_v27 = vld [vmem:[%s2151_s5 + $0xd8] sm:$0xff]  ;;  %v1929_v31 = vld [vmem:[%s2151_s5 + $0xd0] sm:$0xff] }
   0xe   : > { %1152 = vmatpush.bf16.msra.mxu3 %v1933_v15  ;;  %v1904_v32 = vld [vmem:[%s2151_s5 + $0x8] sm:$0xff]  ;;  %v1903_v36 = vld [vmem:[%s2151_s5] sm:$0xff]  ;;  %v1942_v44 = vld [vmem:[%s2151_s5 + $0x138] sm:$0xff] }
   0xf   : > { %1114 = vmatpush.bf16.msra.mxu0 %v1908_v16  ;;  %v1912_v33 = vld [vmem:[%s2151_s5 + $0x48] sm:$0xff]  ;;  %v1911_v37 = vld [vmem:[%s2151_s5 + $0x40] sm:$0xff]  ;;  %v1950_v45 = vld [vmem:[%s2151_s5 + $0x178] sm:$0xff] }
  0x10   : > { %1127 = vmatpush.bf16.msra.mxu1 %v1916_v17  ;;  %v1920_v34 = vld [vmem:[%s2151_s5 + $0x88] sm:$0xff]  ;;  %v1919_v40 = vld [vmem:[%s2151_s5 + $0x80] sm:$0xff]  ;;  %v1958_v46 = vld [vmem:[%s2151_s5 + $0x1b8] sm:$0xff] }
  0x11   : > { %1140 = vmatpush.bf16.msra.mxu2 %v1924_v18  ;;  %v1928_v35 = vld [vmem:[%s2151_s5 + $0xc8] sm:$0xff]  ;;  %v1927_v41 = vld [vmem:[%s2151_s5 + $0xc0] sm:$0xff]  ;;  %v1966_v47 = vld [vmem:[%s2151_s5 + $0x1f8] sm:$0xff] }
  0x12   : > { %1153 = vmatpush.bf16.msra.mxu3 %v1932_v19  ;;  %v1941_v52 = vld [vmem:[%s2151_s5 + $0x130] sm:$0xff]  ;;  %v1940_v56 = vld [vmem:[%s2151_s5 + $0x128] sm:$0xff]  ;;  %v1939_v60 = vld [vmem:[%s2151_s5 + $0x120] sm:$0xff] }
  0x13   : > { %1115 = vmatpush.bf16.msra.mxu0 %v1907_v20  ;;  %v1949_v53 = vld [vmem:[%s2151_s5 + $0x170] sm:$0xff]  ;;  %v1948_v57 = vld [vmem:[%s2151_s5 + $0x168] sm:$0xff]  ;;  %v1947_v61 = vld [vmem:[%s2151_s5 + $0x160] sm:$0xff] }
  0x14   : > { %1128 = vmatpush.bf16.msra.mxu1 %v1915_v21  ;;  %v1957_v54 = vld [vmem:[%s2151_s5 + $0x1b0] sm:$0xff]  ;;  %v1956_v58 = vld [vmem:[%s2151_s5 + $0x1a8] sm:$0xff]  ;;  %v1955_v62 = vld [vmem:[%s2151_s5 + $0x1a0] sm:$0xff] }
  0x15   : > { %1141 = vmatpush.bf16.msra.mxu2 %v1923_v22  ;;  %v1965_v55 = vld [vmem:[%s2151_s5 + $0x1f0] sm:$0xff]  ;;  %v1964_v59 = vld [vmem:[%s2151_s5 + $0x1e8] sm:$0xff]  ;;  %v1963_v63 = vld [vmem:[%s2151_s5 + $0x1e0] sm:$0xff]  ;;  %v302_v22 = vunpack.c.l.b16 %v2120_v3 }
  0x16   : > { %1154 = vmatpush.bf16.msra.mxu3 %v1931_v23  ;;  %v1938_v8 = vld [vmem:[%s2151_s5 + $0x118] sm:$0xff]  ;;  %v1937_v12 = vld [vmem:[%s2151_s5 + $0x110] sm:$0xff]  ;;  %v1936_v16 = vld [vmem:[%s2151_s5 + $0x108] sm:$0xff]  ;;  %v300_v23 = vunpack.c.l.b16 %v2115_v2 }
  0x17   : > { %1116 = vmatpush.bf16.msra.mxu0 %v1906_v24  ;;  %v1946_v9 = vld [vmem:[%s2151_s5 + $0x158] sm:$0xff]  ;;  %v1945_v13 = vld [vmem:[%s2151_s5 + $0x150] sm:$0xff]  ;;  %v1944_v17 = vld [vmem:[%s2151_s5 + $0x148] sm:$0xff] }
  0x18   : > { %1129 = vmatpush.bf16.msra.mxu1 %v1914_v25  ;;  %v1954_v10 = vld [vmem:[%s2151_s5 + $0x198] sm:$0xff]  ;;  %v1953_v14 = vld [vmem:[%s2151_s5 + $0x190] sm:$0xff]  ;;  %v1952_v18 = vld [vmem:[%s2151_s5 + $0x188] sm:$0xff] }
  0x19   : > { %1142 = vmatpush.bf16.msra.mxu2 %v1922_v26  ;;  %v1962_v11 = vld [vmem:[%s2151_s5 + $0x1d8] sm:$0xff]  ;;  %v1961_v15 = vld [vmem:[%s2151_s5 + $0x1d0] sm:$0xff]  ;;  %v1960_v19 = vld [vmem:[%s2151_s5 + $0x1c8] sm:$0xff]  ;;  %v303_v26 = vunpack.c.h.b16 %v2120_v3 }
  0x1a   : > { %1155 = vmatpush.bf16.msra.mxu3 %v1930_v27  ;;  %v1935_v20 = vld [vmem:[%s2151_s5 + $0x100] sm:$0xff]  ;;  %v301_v27 = vunpack.c.h.b16 %v2115_v2  ;;  %v1989_v38 = vld [vmem:[%s2151_s5 + $0x2b0] sm:$0xff]  ;;  %v1988_v42 = vld [vmem:[%s2151_s5 + $0x2a8] sm:$0xff] }
  0x1b   : > { %1117 = vmatpush.bf16.msra.mxu0 %v1905_v28  ;;  %v1943_v21 = vld [vmem:[%s2151_s5 + $0x140] sm:$0xff]  ;;  %v1974_v28 = vld [vmem:[%s2151_s5 + $0x238] sm:$0xff]  ;;  %v1997_v39 = vld [vmem:[%s2151_s5 + $0x2f0] sm:$0xff] }
  0x1c   : > { %1130 = vmatpush.bf16.msra.mxu1 %v1913_v29  ;;  %v1951_v24 = vld [vmem:[%s2151_s5 + $0x180] sm:$0xff]  ;;  %v1982_v29 = vld [vmem:[%s2151_s5 + $0x278] sm:$0xff]  ;;  %v1996_v43 = vld [vmem:[%s2151_s5 + $0x2e8] sm:$0xff] }
  0x1d   : > { %1143 = vmatpush.bf16.msra.mxu2 %v1921_v30  ;;  %v1959_v25 = vld [vmem:[%s2151_s5 + $0x1c0] sm:$0xff]  ;;  %v1990_v30 = vld [vmem:[%s2151_s5 + $0x2b8] sm:$0xff] }
  0x1e   : > { %1156 = vmatpush.bf16.msra.mxu3 %v1929_v31  ;;  %v1998_v31 = vld [vmem:[%s2151_s5 + $0x2f8] sm:$0xff] }
  0x1f   : > { %1118 = vmatpush.bf16.msra.mxu0 %v1904_v32  ;;  %v318_v32 = vpack.c.b16 %v302_v22, %v302_v22  ;;  %v2021_v22 = vld [vmem:[%s2151_s5 + $0x3b0] sm:$0xff] }
  0x20   : > { %1131 = vmatpush.bf16.msra.mxu1 %v1912_v33  ;;  %v316_v33 = vpack.c.b16 %v300_v23, %v300_v23  ;;  %v2029_v23 = vld [vmem:[%s2151_s5 + $0x3f0] sm:$0xff] }
  0x21   : > { %1144 = vmatpush.bf16.msra.mxu2 %v1920_v34  ;;  %v319_v34 = vpack.c.b16 %v303_v26, %v303_v26  ;;  %v2020_v26 = vld [vmem:[%s2151_s5 + $0x3a8] sm:$0xff] }
  0x22   : > { %1157 = vmatpush.bf16.msra.mxu3 %v1928_v35  ;;  %v317_v35 = vpack.c.b16 %v301_v27, %v301_v27  ;;  %v2028_v27 = vld [vmem:[%s2151_s5 + $0x3e8] sm:$0xff] }
  0x23   : > { %1119 = vmatpush.bf16.msra.mxu0 %v1903_v36  ;;  %v1973_v36 = vld [vmem:[%s2151_s5 + $0x230] sm:$0xff] }
  0x24   : > { %1132 = vmatpush.bf16.msra.mxu1 %v1911_v37  ;;  %v1981_v37 = vld [vmem:[%s2151_s5 + $0x270] sm:$0xff] }
  0x25   : > { %1145 = vmatpush.bf16.msra.mxu2 %v1919_v40  ;;  %v1972_v40 = vld [vmem:[%s2151_s5 + $0x228] sm:$0xff] }
  0x26   : > { %1158 = vmatpush.bf16.msra.mxu3 %v1927_v41  ;;  %1120 = vmatmul.bf16.vlgmr.msra.gmra.mxu0 %v312_v49  ;;  %v1980_v41 = vld [vmem:[%s2151_s5 + $0x268] sm:$0xff]  ;;  %v1978_v49 = vld [vmem:[%s2151_s5 + $0x258] sm:$0xff] }
  0x27   : > { %1164 = vmatpush.bf16.msrb.mxu0 %v1942_v44  ;;  %1133 = vmatmul.bf16.vlgmr.msra.gmra.mxu1 %v313_v51  ;;  %v1971_v44 = vld [vmem:[%s2151_s5 + $0x220] sm:$0xff]  ;;  %v1994_v51 = vld [vmem:[%s2151_s5 + $0x2d8] sm:$0xff] }
  0x28   : > { %1177 = vmatpush.bf16.msrb.mxu1 %v1950_v45  ;;  %1146 = vmatmul.bf16.vlgmr.msra.gmra.mxu2 %v314_v48  ;;  %v1979_v45 = vld [vmem:[%s2151_s5 + $0x260] sm:$0xff]  ;;  %v1970_v48 = vld [vmem:[%s2151_s5 + $0x218] sm:$0xff] }
  0x29   : > { %1190 = vmatpush.bf16.msrb.mxu2 %v1958_v46  ;;  %1159 = vmatmul.bf16.vlgmr.msra.gmra.mxu3 %v315_v50  ;;  %v1987_v46 = vld [vmem:[%s2151_s5 + $0x2a0] sm:$0xff]  ;;  %v1986_v50 = vld [vmem:[%s2151_s5 + $0x298] sm:$0xff] }
  0x2a   : > { %1203 = vmatpush.bf16.msrb.mxu3 %v1966_v47  ;;  %v1995_v47 = vld [vmem:[%s2151_s5 + $0x2e0] sm:$0xff] }
  0x2b   : > { %1165 = vmatpush.bf16.msrb.mxu0 %v1941_v52  ;;  %v1969_v52 = vld [vmem:[%s2151_s5 + $0x210] sm:$0xff] }
  0x2c   : > { %1178 = vmatpush.bf16.msrb.mxu1 %v1949_v53  ;;  %v1977_v53 = vld [vmem:[%s2151_s5 + $0x250] sm:$0xff] }
  0x2d   : > { %1191 = vmatpush.bf16.msrb.mxu2 %v1957_v54  ;;  %v1985_v54 = vld [vmem:[%s2151_s5 + $0x290] sm:$0xff] }
  0x2e   : > { %1204 = vmatpush.bf16.msrb.mxu3 %v1965_v55  ;;  %v1993_v55 = vld [vmem:[%s2151_s5 + $0x2d0] sm:$0xff] }
  0x2f   : > { %1166 = vmatpush.bf16.msrb.mxu0 %v1940_v56  ;;  %v1968_v56 = vld [vmem:[%s2151_s5 + $0x208] sm:$0xff] }
  0x30   : > { %1179 = vmatpush.bf16.msrb.mxu1 %v1948_v57  ;;  %v1976_v57 = vld [vmem:[%s2151_s5 + $0x248] sm:$0xff] }
  0x31   : > { %1192 = vmatpush.bf16.msrb.mxu2 %v1956_v58  ;;  %v1984_v58 = vld [vmem:[%s2151_s5 + $0x288] sm:$0xff] }
  0x32   : > { %1205 = vmatpush.bf16.msrb.mxu3 %v1964_v59  ;;  %v1992_v59 = vld [vmem:[%s2151_s5 + $0x2c8] sm:$0xff] }
  0x33   : > { %1167 = vmatpush.bf16.msrb.mxu0 %v1939_v60  ;;  %v1967_v60 = vld [vmem:[%s2151_s5 + $0x200] sm:$0xff] }
  0x34   : > { %1180 = vmatpush.bf16.msrb.mxu1 %v1947_v61  ;;  %v1975_v61 = vld [vmem:[%s2151_s5 + $0x240] sm:$0xff] }
  0x35   : > { %1193 = vmatpush.bf16.msrb.mxu2 %v1955_v62  ;;  %v304_v62 = vunpack.c.l.b16 %v2125_v4 }
  0x36   : > { %1206 = vmatpush.bf16.msrb.mxu3 %v1963_v63  ;;  %v306_v63 = vunpack.c.l.b16 %v2130_v5 }
  0x37   : > { %1168 = vmatpush.bf16.msrb.mxu0 %v1938_v8  ;;  %v1983_v8 = vld [vmem:[%s2151_s5 + $0x280] sm:$0xff] }
  0x38   : > { %1181 = vmatpush.bf16.msrb.mxu1 %v1946_v9  ;;  %v1991_v9 = vld [vmem:[%s2151_s5 + $0x2c0] sm:$0xff] }
  0x39   : > { %1194 = vmatpush.bf16.msrb.mxu2 %v1954_v10  ;;  %v305_v10 = vunpack.c.h.b16 %v2125_v4 }
  0x3a   : > { %1207 = vmatpush.bf16.msrb.mxu3 %v1962_v11  ;;  %v307_v11 = vunpack.c.h.b16 %v2130_v5 }
  0x3b   : > { %1169 = vmatpush.bf16.msrb.mxu0 %v1937_v12  ;;  %v2006_v12 = vld [vmem:[%s2151_s5 + $0x338] sm:$0xff] }
  0x3c   : > { %1182 = vmatpush.bf16.msrb.mxu1 %v1945_v13  ;;  %v2014_v13 = vld [vmem:[%s2151_s5 + $0x378] sm:$0xff] }
  0x3d   : > { %1195 = vmatpush.bf16.msrb.mxu2 %v1953_v14  ;;  %v2022_v14 = vld [vmem:[%s2151_s5 + $0x3b8] sm:$0xff] }
  0x3e   : > { %1208 = vmatpush.bf16.msrb.mxu3 %v1961_v15  ;;  %v2030_v15 = vld [vmem:[%s2151_s5 + $0x3f8] sm:$0xff] }
  0x3f   : > { %1170 = vmatpush.bf16.msrb.mxu0 %v1936_v16  ;;  %v320_v16 = vpack.c.b16 %v304_v62, %v304_v62 }
  0x40   : > { %1183 = vmatpush.bf16.msrb.mxu1 %v1944_v17  ;;  %v322_v17 = vpack.c.b16 %v306_v63, %v306_v63 }
  0x41   : > { %1196 = vmatpush.bf16.msrb.mxu2 %v1952_v18  ;;  %v321_v18 = vpack.c.b16 %v305_v10, %v305_v10 }
  0x42   : > { %1209 = vmatpush.bf16.msrb.mxu3 %v1960_v19  ;;  %v323_v19 = vpack.c.b16 %v307_v11, %v307_v11 }
  0x43   : > { %1171 = vmatpush.bf16.msrb.mxu0 %v1935_v20  ;;  %v2005_v20 = vld [vmem:[%s2151_s5 + $0x330] sm:$0xff] }
  0x44   : > { %1184 = vmatpush.bf16.msrb.mxu1 %v1943_v21  ;;  %v2013_v21 = vld [vmem:[%s2151_s5 + $0x370] sm:$0xff] }
  0x45   : > { %1197 = vmatpush.bf16.msrb.mxu2 %v1951_v24  ;;  %v2004_v24 = vld [vmem:[%s2151_s5 + $0x328] sm:$0xff] }
  0x46   : > { %1210 = vmatpush.bf16.msrb.mxu3 %v1959_v25  ;;  %1172 = vmatmul.bf16.vlgmr.msrb.gmra.mxu0 %v316_v33  ;;  %v2012_v25 = vld [vmem:[%s2151_s5 + $0x368] sm:$0xff]  ;;  %v2010_v33 = vld [vmem:[%s2151_s5 + $0x358] sm:$0xff] }
  0x47   : > { %1216 = vmatpush.bf16.msra.mxu0 %v1974_v28  ;;  %1185 = vmatmul.bf16.vlgmr.msrb.gmra.mxu1 %v317_v35  ;;  %v2003_v28 = vld [vmem:[%s2151_s5 + $0x320] sm:$0xff]  ;;  %v2026_v35 = vld [vmem:[%s2151_s5 + $0x3d8] sm:$0xff] }
  0x48   : > { %1229 = vmatpush.bf16.msra.mxu1 %v1982_v29  ;;  %1198 = vmatmul.bf16.vlgmr.msrb.gmra.mxu2 %v318_v32  ;;  %v2011_v29 = vld [vmem:[%s2151_s5 + $0x360] sm:$0xff]  ;;  %v2002_v32 = vld [vmem:[%s2151_s5 + $0x318] sm:$0xff] }
  0x49   : > { %1242 = vmatpush.bf16.msra.mxu2 %v1990_v30  ;;  %1211 = vmatmul.bf16.vlgmr.msrb.gmra.mxu3 %v319_v34  ;;  %v2019_v30 = vld [vmem:[%s2151_s5 + $0x3a0] sm:$0xff]  ;;  %v2018_v34 = vld [vmem:[%s2151_s5 + $0x398] sm:$0xff] }
  0x4a   : > { %1255 = vmatpush.bf16.msra.mxu3 %v1998_v31  ;;  %v2027_v31 = vld [vmem:[%s2151_s5 + $0x3e0] sm:$0xff] }
  0x4b   : > { %1217 = vmatpush.bf16.msra.mxu0 %v1973_v36  ;;  %v2001_v36 = vld [vmem:[%s2151_s5 + $0x310] sm:$0xff] }
  0x4c   : > { %1230 = vmatpush.bf16.msra.mxu1 %v1981_v37  ;;  %v2009_v37 = vld [vmem:[%s2151_s5 + $0x350] sm:$0xff] }
  0x4d   : > { %1243 = vmatpush.bf16.msra.mxu2 %v1989_v38  ;;  %v2017_v38 = vld [vmem:[%s2151_s5 + $0x390] sm:$0xff] }
  0x4e   : > { %1256 = vmatpush.bf16.msra.mxu3 %v1997_v39  ;;  %v2025_v39 = vld [vmem:[%s2151_s5 + $0x3d0] sm:$0xff] }
  0x4f   : > { %1218 = vmatpush.bf16.msra.mxu0 %v1972_v40  ;;  %v2000_v40 = vld [vmem:[%s2151_s5 + $0x308] sm:$0xff] }
  0x50   : > { %1231 = vmatpush.bf16.msra.mxu1 %v1980_v41  ;;  %v2008_v41 = vld [vmem:[%s2151_s5 + $0x348] sm:$0xff] }
  0x51   : > { %1244 = vmatpush.bf16.msra.mxu2 %v1988_v42  ;;  %v2016_v42 = vld [vmem:[%s2151_s5 + $0x388] sm:$0xff] }
  0x52   : > { %1257 = vmatpush.bf16.msra.mxu3 %v1996_v43  ;;  %v2024_v43 = vld [vmem:[%s2151_s5 + $0x3c8] sm:$0xff] }
  0x53   : > { %1219 = vmatpush.bf16.msra.mxu0 %v1971_v44  ;;  %v308_v44 = vunpack.c.l.b16 %v2135_v6 }
  0x54   : > { %1232 = vmatpush.bf16.msra.mxu1 %v1979_v45  ;;  %v309_v45 = vunpack.c.h.b16 %v2135_v6 }
  0x55   : > { %1245 = vmatpush.bf16.msra.mxu2 %v1987_v46  ;;  %v1999_v46 = vld [vmem:[%s2151_s5 + $0x300] sm:$0xff] }
  0x56   : > { %1258 = vmatpush.bf16.msra.mxu3 %v1995_v47  ;;  %v2007_v47 = vld [vmem:[%s2151_s5 + $0x340] sm:$0xff] }
  0x57   : > { %1220 = vmatpush.bf16.msra.mxu0 %v1970_v48  ;;  %v310_v48 = vunpack.c.l.b16 %v2140_v7 }
  0x58   : > { %1233 = vmatpush.bf16.msra.mxu1 %v1978_v49  ;;  %v311_v49 = vunpack.c.h.b16 %v2140_v7 }
  0x59   : > { %1246 = vmatpush.bf16.msra.mxu2 %v1986_v50  ;;  %v2015_v50 = vld [vmem:[%s2151_s5 + $0x380] sm:$0xff] }
  0x5a   : > { %1259 = vmatpush.bf16.msra.mxu3 %v1994_v51  ;;  %v2023_v51 = vld [vmem:[%s2151_s5 + $0x3c0] sm:$0xff] }
  0x5b   : > { %1221 = vmatpush.bf16.msra.mxu0 %v1969_v52  ;;  %v324_v52 = vpack.c.b16 %v308_v44, %v308_v44 }
  0x5c   : > { %1234 = vmatpush.bf16.msra.mxu1 %v1977_v53  ;;  %v325_v53 = vpack.c.b16 %v309_v45, %v309_v45 }
  0x5d   : > { %1247 = vmatpush.bf16.msra.mxu2 %v1985_v54  ;;  %v326_v54 = vpack.c.b16 %v310_v48, %v310_v48  ;;  %v1336_v48 = vlaneseq (%p25_p0) }
  0x5e   : > { %1260 = vmatpush.bf16.msra.mxu3 %v1993_v55  ;;  %v327_v55 = vpack.c.b16 %v311_v49, %v311_v49 }
  0x5f   : > { %1222 = vmatpush.bf16.msra.mxu0 %v1968_v56  ;;  %v1354_v5 = vand.u32 (%p25_p0), 127, %v1336_v48 }
  0x60   : > { %1235 = vmatpush.bf16.msra.mxu1 %v1976_v57 }
  0x61   : > { %1248 = vmatpush.bf16.msra.mxu2 %v1984_v58 }
  0x62   : > { %1261 = vmatpush.bf16.msra.mxu3 %v1992_v59 }
  0x63   : > { %1223 = vmatpush.bf16.msra.mxu0 %v1967_v60 }
  0x64   : > { %1236 = vmatpush.bf16.msra.mxu1 %v1975_v61 }
  0x65   : > { %1249 = vmatpush.bf16.msra.mxu2 %v1983_v8 }
  0x66   : > { %1262 = vmatpush.bf16.msra.mxu3 %v1991_v9  ;;  %1224 = vmatmul.bf16.vlgmr.msra.gmra.mxu0 %v320_v16 }
  0x67   : > { %1268 = vmatpush.bf16.msrb.mxu0 %v2006_v12  ;;  %1237 = vmatmul.bf16.vlgmr.msra.gmra.mxu1 %v321_v18 }
  0x68   : > { %1281 = vmatpush.bf16.msrb.mxu1 %v2014_v13  ;;  %1250 = vmatmul.bf16.vlgmr.msra.gmra.mxu2 %v322_v17 }
  0x69   : > { %1294 = vmatpush.bf16.msrb.mxu2 %v2022_v14  ;;  %1263 = vmatmul.bf16.vlgmr.msra.gmra.mxu3 %v323_v19 }
  0x6a   : > { %1307 = vmatpush.bf16.msrb.mxu3 %v2030_v15 }
  0x6b   : > { %1269 = vmatpush.bf16.msrb.mxu0 %v2005_v20 }
  0x6c   : > { %1282 = vmatpush.bf16.msrb.mxu1 %v2013_v21 }
  0x6d   : > { %1295 = vmatpush.bf16.msrb.mxu2 %v2021_v22 }
  0x6e   : > { %1308 = vmatpush.bf16.msrb.mxu3 %v2029_v23 }
  0x6f   : > { %1270 = vmatpush.bf16.msrb.mxu0 %v2004_v24 }
  0x70   : > { %1283 = vmatpush.bf16.msrb.mxu1 %v2012_v25 }
  0x71   : > { %1296 = vmatpush.bf16.msrb.mxu2 %v2020_v26 }
  0x72   : > { %1309 = vmatpush.bf16.msrb.mxu3 %v2028_v27 }
  0x73   : > { %1271 = vmatpush.bf16.msrb.mxu0 %v2003_v28 }
  0x74   : > { %1284 = vmatpush.bf16.msrb.mxu1 %v2011_v29 }
  0x75   : > { %1297 = vmatpush.bf16.msrb.mxu2 %v2019_v30 }
  0x76   : > { %1310 = vmatpush.bf16.msrb.mxu3 %v2027_v31 }
  0x77   : > { %1272 = vmatpush.bf16.msrb.mxu0 %v2002_v32 }
  0x78   : > { %1285 = vmatpush.bf16.msrb.mxu1 %v2010_v33 }
  0x79   : > { %1298 = vmatpush.bf16.msrb.mxu2 %v2018_v34 }
  0x7a   : > { %1311 = vmatpush.bf16.msrb.mxu3 %v2026_v35 }
  0x7b   : > { %1273 = vmatpush.bf16.msrb.mxu0 %v2001_v36 }
  0x7c   : > { %1286 = vmatpush.bf16.msrb.mxu1 %v2009_v37 }
  0x7d   : > { %1299 = vmatpush.bf16.msrb.mxu2 %v2017_v38 }
  0x7e   : > { %1312 = vmatpush.bf16.msrb.mxu3 %v2025_v39 }
  0x7f   : > { %1274 = vmatpush.bf16.msrb.mxu0 %v2000_v40 }
  0x80   : > { %1287 = vmatpush.bf16.msrb.mxu1 %v2008_v41 }
  0x81   : > { %1300 = vmatpush.bf16.msrb.mxu2 %v2016_v42 }
  0x82   : > { %1313 = vmatpush.bf16.msrb.mxu3 %v2024_v43 }
  0x83   : > { %1275 = vmatpush.bf16.msrb.mxu0 %v1999_v46 }
  0x84   : > { %1288 = vmatpush.bf16.msrb.mxu1 %v2007_v47 }
  0x85   : > { %1301 = vmatpush.bf16.msrb.mxu2 %v2015_v50  ;;  %v1337_v50 = vshrl.u32 (%p25_p0), %v1336_v48, 7 }
  0x86   : > { %1314 = vmatpush.bf16.msrb.mxu3 %v2023_v51  ;;  %1276 = vmatmul.bf16.vlgmr.msrb.gmra.mxu0 %v324_v52 }
  0x87   : > { %1289 = vmatmul.bf16.vlgmr.msrb.gmra.mxu1 %v325_v53  ;;  %2041 = vset.pattern.permute.xlu1 (%p25_p0), %v1337_v50  ;;  %v2045_v53 = vld [vmem:[%s2312_s2] ss:$0 sm:$0xff] (%p25_p0)  ;;  %s1369_s2 = sshll.u32 (%p25_p0), %s2313_s3, 4  ;;  %s1370_s2 = int_to_ptr.hbm [resolvable:$true] %s1369_s2 }
  0x88   : > { %1302 = vmatmul.bf16.vlgmr.msrb.gmra.mxu2 %v326_v54  ;;  %v2080_v54 = vmov (%p25_p0), 0  }
  0x89   : > { %1315 = vmatmul.bf16.vlgmr.msrb.gmra.mxu3 %v327_v55  ;;  %2043 = vset.pattern.permute.xlu2 (%p25_p0), %v2080_v54 }
  0x8a   :  { %2044 = vset.pattern.permute.xlu0 (%p25_p0), %v2080_v54 }
  0x8f   :  { %1340 = vperm.xlu1 (%p25_p0), %2041, %v2045_v53  }
  0x97   :  { %2042 = vset.pattern.permute.xlu1 (%p25_p0), %v2080_v54 }
  0xa3   : > { %v1121_v56 = vpop.f32.mrf.mxu0 }
  0xa4   : > { %v1134_v57 = vpop.f32.mrf.mxu1 }
  0xa5   : > { %v1135_v58 = vadd.f32 %v1134_v57, %v1121_v56 }
  0xab   : > { %v1147_v59 = vpop.f32.mrf.mxu2  ;;  %v1123_v62 = vpop.f32.mrf.mxu0 }
  0xac   : > { %v1148_v60 = vadd.f32 %v1147_v59, %v1135_v58  ;;  %v1160_v61 = vpop.f32.mrf.mxu3  ;;  %v1136_v8 = vpop.f32.mrf.mxu1 }
  0xae   : > { %v1161_v63 = vadd.f32 %v1160_v61, %v1148_v60 }
  0xb3   : > { %v1149_v9 = vpop.f32.mrf.mxu2 }
  0xb4   : > { %v1162_v10 = vpop.f32.mrf.mxu3 }
  0xc3   : > { %v1173_v11 = vpop.f32.mrf.mxu0 }
  0xc4   : > { %v1186_v12 = vpop.f32.mrf.mxu1  ;;  %v1174_v21 = vadd.f32 %v1173_v11, %v1161_v63 }
  0xc6   : > { %v1187_v25 = vadd.f32 %v1186_v12, %v1174_v21 }
  0xcb   : > { %v1199_v13 = vpop.f32.mrf.mxu2  ;;  %v1175_v15 = vpop.f32.mrf.mxu0 }
  0xcc   : > { %v1212_v14 = vpop.f32.mrf.mxu3  ;;  %v1188_v16 = vpop.f32.mrf.mxu1  ;;  %v1200_v27 = vadd.f32 %v1199_v13, %v1187_v25 }
  0xce   : > { %v1213_v30 = vadd.f32 %v1212_v14, %v1200_v27 }
  0xd3   : > { %v1201_v17 = vpop.f32.mrf.mxu2 }
  0xd4   : > { %v1214_v18 = vpop.f32.mrf.mxu3 }
  0xe3   : > { %v1225_v19 = vpop.f32.mrf.mxu0 }
  0xe4   : > { %v1238_v20 = vpop.f32.mrf.mxu1  ;;  %v1226_v31 = vadd.f32 %v1225_v19, %v1213_v30 }
  0xe6   : > { %v1239_v32 = vadd.f32 %v1238_v20, %v1226_v31 }
  0xeb   : > { %v1251_v22 = vpop.f32.mrf.mxu2  ;;  %v1227_v24 = vpop.f32.mrf.mxu0 }
  0xec   : > { %v1264_v23 = vpop.f32.mrf.mxu3  ;;  %v1240_v26 = vpop.f32.mrf.mxu1  ;;  %v1252_v33 = vadd.f32 %v1251_v22, %v1239_v32 }
  0xee   : > { %v1265_v34 = vadd.f32 %v1264_v23, %v1252_v33 }
  0xf3   : > { %v1253_v28 = vpop.f32.mrf.mxu2 }
  0xf4   : > { %v1266_v29 = vpop.f32.mrf.mxu3 }
 0x101   :  { %v1341_v2 = vpop.permute.xlu1 (%p25_p0), %1340 }
 0x103   : > { %v1277_v35 = vpop.f32.mrf.mxu0 }
 0x104   : > { %v1290_v36 = vpop.f32.mrf.mxu1  ;;  %v1278_v37 = vadd.f32 %v1277_v35, %v1265_v34 }
 0x106   : > { %v1291_v38 = vadd.f32 %v1290_v36, %v1278_v37 }
 0x10b   : > { %v1303_v39 = vpop.f32.mrf.mxu2  ;;  %v1279_v42 = vpop.f32.mrf.mxu0 }
 0x10c   : > { %v1316_v40 = vpop.f32.mrf.mxu3  ;;  %v1304_v41 = vadd.f32 %v1303_v39, %v1291_v38  ;;  %v1292_v43 = vpop.f32.mrf.mxu1 }
 0x10e   : > { %v1317_v44 = vadd.f32 %v1316_v40, %v1304_v41 }
 0x110   : > { %1323 = vst.msk [vmem:[%s1321_s6] sm:$0x1f] %vm1322_vm0, %v1317_v44  ;;  %27 = sbr.rel (!%p25_p0) target bundleno = 4 (0x4), region = 41 }
 0x113   : > { %v1305_v45 = vpop.f32.mrf.mxu2 }
 0x114   : > { %v1318_v46 = vpop.f32.mrf.mxu3 }
 0x117   :  { %v1324_v47 = vld [vmem:[#allocation2] sm:$0x1f]  ;;  %v1325_v51 = vld [vmem:[#allocation2 + $0x8] sm:$0x1f] }
 0x118   :  { %v1327_v49 = vsel %vm1322_vm0, %v1324_v47, 0.0  ;;  %v1330_v52 = vsel %vm1322_vm0, %v1325_v51, 0.0 }
 0x119   :  { %1328 = vadd.xlane.f32.xlu0 %v1327_v49 }
 0x121   :  { %1331 = vadd.xlane.f32.xlu0 %v1330_v52 }
 0x18c   :  { %v1329_v0 = vpop.xlane.xlu0 %1328 }
 0x18d   :  { %v1343_v3 = vadd.f32 %v1341_v2, %v1329_v0 }
 0x18f   :  { %1348 = vperm.xlu1 %2042, %v1343_v3  }
 0x194   :  { %v1332_v1 = vpop.xlane.xlu0 %1331 }
 0x195   :  { %v1344_v4 = vadd.f32 %v1341_v2, %v1332_v1 }
 0x197   :  { %1351 = vperm.xlu2 %2043, %v1344_v4  }
 0x1f1   :  { %v1352_v6 = vpop.permute.xlu2 %1351 }
 0x1f2   :  { %v1356_v55 = vperm.slane %v1352_v6, %v1354_v5 }
 0x201   :  { %v1349_v7 = vpop.permute.xlu1 %1348 }
 0x202   :  { %v1355_v56 = vperm.slane %v1349_v7, %v1354_v5 }
 0x204   :  { %v1358_v57 = vsel %vm1357_vm1, %v1356_v55, %v1355_v56 }
 0x205   :  { %1361 = vst.msk [vmem:[#allocation3] sm:$0x3] %vm1360_vm2, %v1358_v57 }
 0x206   :  { %1372 = dma.vmem_to_hbm [thread:$0]  %s1368_s9, 32, %s1370_s2, [#allocation4]  }
 0x207   :  { %2074 = dma.done.wait [#allocation4], 32  }
 0x208   :  { %2075 = vsyncadd [#allocation4], 4294967264 }
 0x209   :  { %1377 = vsyncpa [#allocation4], 1 }

</bundles_post_ra>
